<compile_context>
chip_gen: v7x
topology: tpu7x:2x2x1
jax: 0.10.0
libtpu: 0.0.40
codegen_flags: <defaults>
</compile_context>

<pallas_src>
import math

import jax
import jax.numpy as jnp
from jax.experimental import pallas as pl
from jax.experimental.pallas import tpu as pltpu


def _pe_add_kernel(inv_freq_ref, phase_ref, x_ref, o_ref):
    """o = x + sin(pos * inv_freq + phase); inv_freq/phase are (1, d_model) VMEM-resident."""
    tm, _ = x_ref.shape                           # block shape (static)
    i = pl.program_id(0)                          # block index along seq axis

    # Global position for every row of this tile, broadcast over channels.
    pos = (jax.lax.broadcasted_iota(jnp.int32, (tm, 1), 0) + i * tm).astype(jnp.float32)

    # One mul + one add + one sin per element (f32 for range-reduction precision).
    angle = pos * inv_freq_ref[...] + phase_ref[...]
    pe = jnp.sin(angle)

    # Add in the input dtype: pe magnitude <= 1, so a single downcast is safe
    # and keeps the bf16 path 2x-dense on v6e/v7x (no-op for f32).
    o_ref[...] = x_ref[...] + pe.astype(o_ref.dtype)


def _choose_block_rows(seq_len: int, d_model: int, dtype) -> int:
    """Row-tile: biggest block under a 12 MiB 4-buffer budget, dtype-aligned, >=4 grid steps."""
    itemsize = jnp.dtype(dtype).itemsize
    # Sub-32-bit dtypes pack along sublanes: 8 rows/tile f32, 16 bf16, 32 int8/fp8.
    row_align = max(8, 32 // itemsize)
    per_row_bytes = d_model * itemsize
    vmem_budget = 12 * 1024 * 1024                # 2 in + 2 out live buffers, safe on v5e/v6e/v7x
    tm = max(row_align, vmem_budget // (4 * per_row_bytes))
    # Cap so the grid has >= ~4 steps when seq_len allows it: lets the
    # "parallel" axis shard across v7x's two TensorCores.
    quarter = pl.cdiv(pl.cdiv(seq_len, 4), row_align) * row_align
    tm = min(tm, max(row_align, quarter))
    tm = max(row_align, (tm // row_align) * row_align)
    if seq_len <= tm:
        return seq_len                            # full-dim block is always legal
    return tm


def position_encoding_forward(word_embeddings: jax.Array,
                              *,
                              max_len: int | None = None,
                              donate_input: bool = False) -> jax.Array:
    """word_embeddings: (seq_len, d_model); returns x + PE[:seq_len] (same dtype)."""
    seq_len, d_model = word_embeddings.shape
    assert d_model % 2 == 0, "d_model must be even (matches torch 0::2 / 1::2 fill)"
    if max_len is not None:
        assert seq_len <= max_len, "seq_len must be <= max_len (matches pe[:x.size(0)])"

    # Column-only tables (computed once, 2 * d_model * 4 bytes of HBM):
    #   inv_freq[c] = 1 / 10000**((c - c%2) / d_model)   (same value for the sin/cos pair)
    #   phase[c]    = 0 for even c (sin), pi/2 for odd c (cos via sin(a + pi/2)).
    half_idx = jnp.arange(0, d_model, 2, dtype=jnp.float32)
    inv_half = 1.0 / jnp.power(jnp.float32(10000.0), half_idx / float(d_model))
    inv_freq = jnp.repeat(inv_half, 2).reshape(1, d_model).astype(jnp.float32)
    phase = jnp.tile(jnp.array([0.0, math.pi / 2.0], dtype=jnp.float32),
                     d_model // 2).reshape(1, d_model)

    tm = _choose_block_rows(seq_len, d_model, word_embeddings.dtype)
    grid = (pl.cdiv(seq_len, tm),)

    itemsize = word_embeddings.dtype.itemsize
    cost = pl.CostEstimate(
        flops=3 * seq_len * d_model,                              # mul + add + add
        transcendentals=seq_len * d_model,                        # one sin per element
        bytes_accessed=2 * seq_len * d_model * itemsize + 2 * d_model * 4,
    )

    const_spec = pl.BlockSpec((1, d_model), lambda i: (0, 0))     # VMEM-resident tables

    return pl.pallas_call(
        _pe_add_kernel,
        out_shape=jax.ShapeDtypeStruct((seq_len, d_model), word_embeddings.dtype),
        grid=grid,
        in_specs=[const_spec,                                     # inv_freq
                  const_spec,                                     # phase
                  pl.BlockSpec((tm, d_model), lambda i: (i, 0))], # x
        out_specs=pl.BlockSpec((tm, d_model), lambda i: (i, 0)),
        input_output_aliases=({2: 0} if donate_input else {}),
        cost_estimate=cost,
        compiler_params=pltpu.CompilerParams(
            dimension_semantics=("parallel",),    # elementwise: megacore-shard on v7x
            vmem_limit_bytes=24 * 1024 * 1024,    # headroom over the 12 MiB tile budget
        ),
    )(inv_freq, phase, word_embeddings)


def _reference_pe(d_model: int, max_len: int) -> jax.Array:
    """Plain-JAX pe buffer identical to the torch __init__ (for the check only)."""
    position = jnp.arange(max_len, dtype=jnp.float32)[:, None]
    embedding_index = jnp.arange(0, d_model, 2, dtype=jnp.float32)
    div_term = 1.0 / jnp.power(jnp.float32(10000.0), embedding_index / d_model)
    angles = position * div_term
    pe = jnp.zeros((max_len, d_model), dtype=jnp.float32)
    pe = pe.at[:, 0::2].set(jnp.sin(angles))
    pe = pe.at[:, 1::2].set(jnp.cos(angles))
    return pe


if __name__ == "__main__":
    # Small shapes consistent with the module: seq_len <= max_len, even d_model.
    d_model = 32
    max_len = 16
    seq_len = 8

    key = jax.random.PRNGKey(0)
    word_embeddings = jax.random.normal(key, (seq_len, d_model), dtype=jnp.float32)

    out = position_encoding_forward(word_embeddings, max_len=max_len)
    out = jax.block_until_ready(out)

    # Reference check in plain JAX (same math as the torch forward).
    ref = word_embeddings + _reference_pe(d_model, max_len)[:seq_len, :]
    assert out.shape == (seq_len, d_model)
    assert out.dtype == jnp.float32
    assert jnp.allclose(out, ref, atol=1e-5, rtol=1e-5)

    print("KERNEL_OK")
</pallas_src>

<mosaic_0001>
module attributes {stable_mosaic.version = 11 : i64} {
  func.func @_pe_add_kernel(%arg0: i32, %arg1: memref<1x32xf32, #tpu.memory_space<vmem>>, %arg2: memref<1x32xf32, #tpu.memory_space<vmem>>, %arg3: memref<8x32xf32, #tpu.memory_space<vmem>>, %arg4: memref<8x32xf32, #tpu.memory_space<vmem>>) attributes {dimension_semantics = [#tpu.dimension_semantics<parallel>], iteration_bounds = array<i64: 1>, scalar_prefetch = 0 : i64, scratch_operands = 0 : i64, tpu.core_type = #tpu.core_type<tc>, window_params = [{pipeline_mode = #tpu.pipeline_mode<synchronous>, transform_indices = @transform_0, window_bounds = array<i64: 1, 32>}, {pipeline_mode = #tpu.pipeline_mode<synchronous>, transform_indices = @transform_1, window_bounds = array<i64: 1, 32>}, {transform_indices = @transform_2, window_bounds = array<i64: 8, 32>}, {transform_indices = @transform_3, window_bounds = array<i64: 8, 32>}]} {
    %0 = tpu.iota {dimensions = array<i32: 0>} : vector<8x1xi32>
    %c8_i32 = arith.constant 8 : i32
    %1 = arith.muli %arg0, %c8_i32 : i32
    %2 = vector.broadcast %1 : i32 to vector<8x1xi32>
    %3 = arith.addi %0, %2 : vector<8x1xi32>
    %4 = arith.sitofp %3 : vector<8x1xi32> to vector<8x1xf32>
    %c0 = arith.constant 0 : index
    %c0_0 = arith.constant 0 : index
    %5 = vector.load %arg1[%c0, %c0_0] : memref<1x32xf32, #tpu.memory_space<vmem>>, vector<1x32xf32>
    %6 = vector.broadcast %4 : vector<8x1xf32> to vector<8x32xf32>
    %7 = vector.broadcast %5 : vector<1x32xf32> to vector<8x32xf32>
    %8 = arith.mulf %6, %7 : vector<8x32xf32>
    %c0_1 = arith.constant 0 : index
    %c0_2 = arith.constant 0 : index
    %9 = vector.load %arg2[%c0_1, %c0_2] : memref<1x32xf32, #tpu.memory_space<vmem>>, vector<1x32xf32>
    %10 = vector.broadcast %9 : vector<1x32xf32> to vector<8x32xf32>
    %11 = arith.addf %8, %10 : vector<8x32xf32>
    %12 = math.sin %11 : vector<8x32xf32>
    %c0_3 = arith.constant 0 : index
    %c0_4 = arith.constant 0 : index
    %13 = vector.load %arg3[%c0_3, %c0_4] : memref<8x32xf32, #tpu.memory_space<vmem>>, vector<8x32xf32>
    %14 = arith.addf %13, %12 : vector<8x32xf32>
    %c0_5 = arith.constant 0 : index
    %c0_6 = arith.constant 0 : index
    %15 = vector.load %arg4[%c0_5, %c0_6] : memref<8x32xf32, #tpu.memory_space<vmem>>, vector<8x32xf32>
    tpu.vector_store %arg4[%c0_5, %c0_6], %14 {strides = array<i32>} : memref<8x32xf32, #tpu.memory_space<vmem>>, vector<8x32xf32>,
    return
  }
  func.func @transform_0(%arg0: i32) -> (i32, i32) {
    %c0_i32 = arith.constant 0 : i32
    %c0_i32_0 = arith.constant 0 : i32
    %c0_i32_1 = arith.constant 0 : i32
    return %c0_i32, %c0_i32_0 : i32, i32
  }
  func.func @transform_1(%arg0: i32) -> (i32, i32) {
    %c0_i32 = arith.constant 0 : i32
    %c0_i32_0 = arith.constant 0 : i32
    %c0_i32_1 = arith.constant 0 : i32
    return %c0_i32, %c0_i32_0 : i32, i32
  }
  func.func @transform_2(%arg0: i32) -> (i32, i32) {
    %c0_i32 = arith.constant 0 : i32
    %c0_i32_0 = arith.constant 0 : i32
    return %arg0, %c0_i32 : i32, i32
  }
  func.func @transform_3(%arg0: i32) -> (i32, i32) {
    %c0_i32 = arith.constant 0 : i32
    %c0_i32_0 = arith.constant 0 : i32
    return %arg0, %c0_i32 : i32, i32
  }
}

</mosaic_0001>

<bundles_post_ra>
// kernel: tpu_custom_call.1
= control target key start
LH: loop header
LB: loop body
LE: loop exit
PB: predicated region body
PF: predicated region fallthrough
CT: control target
= control target key end

     0   :  { %8 = vsyncpa [#allocation3], 0  ;;  %s369_s0 = inlined_call_operand.hbm [shape: f32[1,32], index: 0, kind: input, shape index: {}]   ;;  %s370_s1 = inlined_call_operand.vmem [shape: f32[1,32], index: 1, kind: input, shape index: {}]   ;;  %s371_s2 = inlined_call_operand.hbm [shape: f32[8,32], index: 2, kind: input, shape index: {}]   ;;  %s372_s3 = inlined_call_operand.hbm [shape: f32[8,32], index: 3, kind: output, shape index: {}]  }
   0x1   :  { %9 = vsyncpa [#allocation6], 0 }
   0x2   :  { %10 = vsyncpa [#allocation4], 0  ;;  %s280_s12 = smov [#allocation2]   ;;  %s281_s14 = smov [#allocation5]  }
   0x3   :  { %s17_s13 = sshll.u32 %s280_s12, 4  ;;  %s29_s15 = sshll.u32 %s281_s14, 4  ;;  %s18_s13 = int_to_ptr.vmem [resolvable:$true] %s17_s13  ;;  %s30_s15 = int_to_ptr.vmem [resolvable:$true] %s29_s15 }
   0x4   :  { %s208_s18 = scalar_lea.hbm %s369_s0, 16 }
   0x5   :  { %p209_p0 = scmp.ne.s32.totalorder %s369_s0, %s208_s18  ;;  %p212_p1 = scmp.lt.u32.totalorder %s208_s18, %s369_s0 }
   0x7   :  { %p214_p2 = pnand %p212_p1, %p209_p0 }
   0x9   :  { %217 = shalt.err (!%p214_p2)
}
   0xa   :  { %s218_s23 = scalar_lea.vmem %s18_s13, 16  ;;  %s222_s24 = scalar_lea.vmem %s18_s13, 32 }
   0xb   :  { %p219_p3 = scmp.ne.s32.totalorder %s18_s13, %s218_s23  ;;  %p223_p4 = scmp.lt.s32.totalorder %s18_s13, %s18_s13 }
   0xc   :  { %p224_p5 = scmp.lt.s32.totalorder %s222_s24, %s218_s23 }
   0xe   :  { %p225_p6 = por %p224_p5, %p223_p4 }
  0x10   :  { %p226_p7 = pnand %p225_p6, %p219_p3 }
  0x12   :  { %229 = shalt.err (!%p226_p7)
}
  0x13   :  { %20 = dma.hbm_to_vmem [thread:$0]  %s369_s0, 16, %s18_s13, [#allocation3]  }
  0x14   :  { %s230_s29 = scalar_lea.hbm %s371_s2, 128 }
  0x15   :  { %p231_p8 = scmp.ne.s32.totalorder %s371_s2, %s230_s29  ;;  %p234_p9 = scmp.lt.u32.totalorder %s230_s29, %s371_s2 }
  0x17   :  { %p236_p10 = pnand %p234_p9, %p231_p8 }
  0x19   :  { %239 = shalt.err (!%p236_p10)
}
  0x1a   :  { %s240_s7 = scalar_lea.vmem %s30_s15, 128  ;;  %p245_p12 = scmp.lt.s32.totalorder %s30_s15, %s30_s15 }
  0x1b   :  { %p241_p11 = scmp.ne.s32.totalorder %s30_s15, %s240_s7  ;;  %p246_p13 = scmp.lt.s32.totalorder %s240_s7, %s240_s7 }
  0x1d   :  { %p247_p0 = por %p246_p13, %p245_p12 }
  0x1f   :  { %p248_p1 = pnand %p247_p0, %p241_p11 }
  0x21   :  { %251 = shalt.err (!%p248_p1)
}
  0x22   :  { %32 = dma.hbm_to_vmem [thread:$0]  %s371_s2, 128, %s30_s15, [#allocation6]  }
  0x23   :  { %274 = dma.done.wait [#allocation3], 16  }
  0x24   :  { %275 = vsyncadd [#allocation3], 4294967280 }
  0x25   :  { %276 = dma.done.wait [#allocation6], 128  }
  0x26   :  { %277 = vsyncadd [#allocation6], 4294967168  ;;  %v39_v0 = vlaneseq  ;;  %v185_v3 = vld [vmem:[#allocation2] ss:$0 sm:$0xff]  ;;  %v282_v18 = vmov 683565275  }
  0x27   :  { %v186_v4 = vld [vmem:[%s370_s1] ss:$0 sm:$0xff]  ;;  %v283_v20 = vmov 2475754826   ;;  %v284_v22 = vmov 2131351028  }
  0x28   :  { %v40_v1 = vshrl.u32 %v39_v0, 7  ;;  %v285_v24 = vmov 2102212464   ;;  %v286_v26 = vmov 920167782   ;;  %s288_s1 = smov [#allocation7]  }
  0x29   :  { %v287_v33 = vmov 1326507024   ;;  %s175_s2 = sshll.u32 %s288_s1, 4  ;;  %vm167_vm13 = vcmask 261120   ;;  %s176_s2 = int_to_ptr.vmem [resolvable:$true] %s175_s2 }
  0x2a   :  { %v44_v2 = vcvt.s32.f32 %v40_v1  ;;  %s252_s11 = scalar_lea.vmem %s176_s2, 128  ;;  %p257_p3 = scmp.lt.s32.totalorder %s176_s2, %s176_s2 }
  0x2b   :  { %p253_p2 = scmp.ne.s32.totalorder %s176_s2, %s252_s11  ;;  %p258_p4 = scmp.lt.s32.totalorder %s252_s11, %s252_s11 }
  0x2c   :  { %v52_v5 = vmul.f32 %v185_v3, %v44_v2 }
  0x2d   :  { %p259_p5 = por %p258_p4, %p257_p3 }
  0x2e   :  { %v336_v6 = vadd.f32 %v186_v4, %v52_v5 }
  0x2f   :  { %p260_p6 = pnand %p259_p5, %p253_p2 }
  0x30   :  { %v64_v7 = vand.u32 2139095040, %v336_v6  ;;  %v61_v9 = vand.u32 2147483647, %v336_v6  ;;  %vm63_vm7 = vcmp.lt.s32.totalorder %v336_v6, 0  ;;  %vm153_vm12 = vweird.f32 %v336_v6 }
  0x32   :  { %v65_v8 = vshrl.u32 %v64_v7, 23  ;;  %v68_v12 = vand.u32 8388607, %v61_v9  ;;  %vm62_vm8 = vcmp.le.f32.partialorder %v61_v9, 0.7853982 }
  0x34   :  { %v187_v10 = vadd.s32 4294967169, %v65_v8  ;;  %v69_v15 = vor.u32 8388608, %v68_v12 }
  0x36   :  { %v71_v11 = vadd.s32 1, %v187_v10  ;;  %v109_v35 = vshll.u32 %v69_v15, 8 }
  0x38   :  { %vm72_vm0 = vcmp.gt.s32.totalorder %v71_v11, 0 }
  0x39   :  { %v73_v13 = vsel %vm72_vm0, %v71_v11, 0 }
  0x3a   :  { %v75_v14 = vand.u32 31, %v73_v13  ;;  %v74_v16 = vshrl.u32 %v73_v13, 5 }
  0x3c   :  { %v76_v17 = vsub.s32 32, %v75_v14  ;;  %v78_v19 = vshll.u32 %v282_v18, %v75_v14  ;;  %v81_v21 = vshll.u32 %v283_v20, %v75_v14  ;;  %v84_v23 = vshll.u32 %v284_v22, %v75_v14 }
  0x3d   :  { %v87_v25 = vshll.u32 %v285_v24, %v75_v14  ;;  %v90_v27 = vshll.u32 %v286_v26, %v75_v14  ;;  %vm93_vm1 = vcmp.lt.s32.totalorder %v74_v16, 1  ;;  %vm96_vm2 = vcmp.lt.s32.totalorder %v74_v16, 4 }
  0x3e   :  { %v77_v28 = vshrl.u32 %v282_v18, %v76_v17  ;;  %v79_v29 = vshrl.u32 %v283_v20, %v76_v17  ;;  %v82_v30 = vshrl.u32 %v284_v22, %v76_v17  ;;  %v85_v31 = vshrl.u32 %v285_v24, %v76_v17 }
  0x3f   :  { %v88_v32 = vshrl.u32 %v286_v26, %v76_v17  ;;  %v91_v34 = vshrl.u32 %v287_v33, %v76_v17  ;;  %vm94_vm3 = vcmp.lt.s32.totalorder %v74_v16, 2  ;;  %vm95_vm4 = vcmp.lt.s32.totalorder %v74_v16, 3  ;;  %v165_v33 = vld [vmem:[#allocation5] sm:$0xff] }
  0x40   :  { %v80_v36 = vor.u32 %v79_v29, %v78_v19  ;;  %v83_v37 = vor.u32 %v82_v30, %v81_v21  ;;  %v86_v38 = vor.u32 %v85_v31, %v84_v23 }
  0x41   :  { %v89_v39 = vor.u32 %v88_v32, %v87_v25  ;;  %v92_v40 = vor.u32 %v91_v34, %v90_v27 }
  0x42   :  { %v97_v41 = vsel %vm93_vm1, %v77_v28, %v80_v36  ;;  %v98_v42 = vsel %vm96_vm2, %v86_v38, 2102212464  ;;  %v101_v43 = vsel %vm93_vm1, %v80_v36, %v83_v37  ;;  %v105_v44 = vsel %vm93_vm1, %v83_v37, %v86_v38 }
  0x43   :  { %v99_v45 = vsel %vm95_vm4, %v83_v37, %v98_v42  ;;  %v102_v46 = vsel %vm96_vm2, %v89_v39, 920167782  ;;  %v106_v47 = vsel %vm96_vm2, %v92_v40, 1326507024 }
  0x44   :  { %v103_v48 = vsel %vm95_vm4, %v86_v38, %v102_v46  ;;  %v107_v49 = vsel %vm95_vm4, %v89_v39, %v106_v47  ;;  %v100_v50 = vsel %vm94_vm3, %v97_v41, %v99_v45 }
  0x45   :  { %v104_v51 = vsel %vm94_vm3, %v101_v43, %v103_v48  ;;  %v108_v52 = vsel %vm94_vm3, %v105_v44, %v107_v49  ;;  %v116_v57 = vmul.u32 %v109_v35, %v100_v50 }
  0x46   :  { %v342_v53 = vmul.u32.u64.low %v109_v35, %v108_v52  ;;  %v343_v54 = vmul.u32.u64.high %v109_v35, %v108_v52, %v342_v53  ;;  %v345_v55 = vmul.u32.u64.low %v109_v35, %v104_v51  ;;  %v346_v56 = vmul.u32.u64.high %v109_v35, %v104_v51, %v345_v55 }
  0x48   :  { %vm118_vm5 = vc.u32 %v343_v54, %v345_v55  ;;  %v119_v58 = vadd.s32 1, %v346_v56  ;;  %v117_v5 = vadd.s32 %v345_v55, %v343_v54 }
  0x4a   :  { %v120_v59 = vsel %vm118_vm5, %v119_v58, %v346_v56 }
  0x4b   :  { %v121_v60 = vadd.s32 %v120_v59, %v116_v57 }
  0x4d   :  { %v122_v61 = vadd.s32 536870912, %v121_v60 }
  0x4f   :  { %v123_v62 = vshrl.u32 %v122_v61, 30 }
  0x51   :  { %v124_v63 = vshll.u32 %v123_v62, 30  ;;  %v147_v19 = vsub.s32 4, %v123_v62 }
  0x53   :  { %v125_v0 = vsub.s32 %v121_v60, %v124_v63  ;;  %v148_v22 = vsel %vm63_vm7, %v147_v19, %v123_v62 }
  0x54   :  { %v150_v25 = vsel %vm62_vm8, 0, %v148_v22 }
  0x55   :  { %v127_v1 = vsub.s32 0, %v125_v0  ;;  %v154_v26 = vadd.s32 3, %v150_v25 }
  0x57   :  { %v188_v2 = vmin.u32 %v127_v1, %v125_v0  ;;  %v155_v27 = vand.u32 3, %v154_v26 }
  0x59   :  { %v129_v3 = vclz %v188_v2  ;;  %vm160_vm9 = vcmp.eq.s32.totalorder %v155_v27, 2  ;;  %vm157_vm10 = vcmp.eq.s32.totalorder %v155_v27, 0  ;;  %vm156_vm11 = vcmp.lt.s32.totalorder %v155_v27, 2 }
  0x5b   :  { %v189_v4 = vadd.s32 4294967294, %v129_v3 }
  0x5d   :  { %vm190_vm6 = vcmp.lt.s32.totalorder %v189_v4, 0 }
  0x5e   :  { %v132_v7 = vsel %vm190_vm6, 0, %v189_v4 }
  0x5f   :  { %v133_v8 = vsub.s32 32, %v132_v7  ;;  %v134_v10 = vshll.u32 %v125_v0, %v132_v7  ;;  %v137_v11 = vsub.s32 4294967266, %v132_v7 }
  0x61   :  { %v135_v12 = vshrl.u32 %v117_v5, %v133_v8  ;;  %v138_v13 = vadd.s32 127, %v137_v11 }
  0x63   :  { %v136_v14 = vor.u32 %v135_v12, %v134_v10  ;;  %v139_v15 = vshll.u32 %v138_v13, 23 }
  0x65   :  { %v140_v16 = vor.u32 4788187, %v139_v15  ;;  %v143_v17 = vcvt.s32.f32 %v136_v14 }
  0x67   :  { %v141_v18 = vand.u32 2147483647, %v140_v16 }
  0x69   :  { %v144_v20 = vmul.f32 %v143_v17, %v141_v18 }
  0x6b   :  { %v145_v21 = vxor.u32 2147483648, %v144_v20 }
  0x6d   :  { %v146_v23 = vsel %vm63_vm7, %v145_v21, %v144_v20 }
  0x6e   :  { %v149_v24 = vsel %vm62_vm8, %v336_v6, %v146_v23 }
  0x6f   :  { %204 = vcosq.f32 %v149_v24 }
  0x70   :  { %206 = vsinq.f32 %v149_v24 }
  0x79   :  { %v205_v28 = vpop.eup %204 }
  0x7a   :  { %v207_v29 = vpop.eup %206  ;;  %v161_v30 = vxor.u32 2147483648, %v205_v28 }
  0x7b   :  { %v158_v31 = vxor.u32 2147483648, %v207_v29 }
  0x7c   :  { %v162_v9 = vsel %vm160_vm9, %v161_v30, %v207_v29 }
  0x7d   :  { %v159_v32 = vsel %vm157_vm10, %v205_v28, %v158_v31 }
  0x7e   :  { %v163_v34 = vsel %vm156_vm11, %v159_v32, %v162_v9 }
  0x7f   :  { %v164_v35 = vsel %vm153_vm12, nan, %v163_v34 }
  0x80   :  { %v166_v36 = vadd.f32 %v165_v33, %v164_v35 }
  0x82   :  { %168 = vst.msk [vmem:[#allocation7] sm:$0xff] %vm167_vm13, %v166_v36 }
  0x83   :  { %263 = shalt.err (!%p260_p6)
}
  0x84   :  { %s264_s14 = scalar_lea.hbm %s372_s3, 128 }
  0x85   :  { %p265_p7 = scmp.ne.s32.totalorder %s372_s3, %s264_s14  ;;  %p268_p8 = scmp.lt.u32.totalorder %s264_s14, %s372_s3 }
  0x87   :  { %p270_p9 = pnand %p268_p8, %p265_p7 }
  0x89   :  { %273 = shalt.err (!%p270_p9)
}
  0x8a   :  { %178 = dma.vmem_to_hbm [thread:$0]  %s176_s2, 128, %s372_s3, [#allocation4]  }
  0x8b   :  { %278 = dma.done.wait [#allocation4], 128  }
  0x8c   :  { %279 = vsyncadd [#allocation4], 4294967168 }
  0x8d   :  { %182 = vsyncpa [#allocation3], 1 }
  0x8e   :  { %183 = vsyncpa [#allocation6], 1 }
  0x8f   :  { %184 = vsyncpa [#allocation4], 1 }

</bundles_post_ra>
